<compile_context>
chip_gen: v7x
topology: tpu7x:2x2x1
jax: 0.10.0
libtpu: 0.0.40
codegen_flags: <defaults>
</compile_context>

<pallas_src>
import numpy as np
import jax
import jax.numpy as jnp
from jax.experimental import pallas as pl
from jax.experimental.pallas import tpu as pltpu


_VMEM_INPUT_BUDGET = 32 * 1024 * 1024   # 2 inputs x 2 buffers x block  (all gens)
_VMEM_LIMIT_BYTES = 48 * 1024 * 1024    # explicit scoped-VMEM limit (< 64 MiB v7x)
_TARGET_BLOCK_BYTES = 4 * 1024 * 1024   # per-input block target (amortize step cost)
_TB_CAP = 2048                          # ligand-tile hard cap


def _round_up(x, m):
    return -(-x // m) * m


def _msd_kernel(pred_ref, true_ref, invn_ref, out_ref):
    # pred_ref / true_ref : (TB, LK) f32 — one lane-chunk of the flattened
    #                       (xyz*atoms) row per ligand, zero padded.
    # invn_ref            : (TB, 1) f32 — 1/n_i (0 for padded ligands).
    # out_ref             : (TB, 1) f32 — mean squared deviation, accumulated
    #                       across the lane-chunk (k) grid axis.
    k = pl.program_id(1)

    @pl.when(k == 0)
    def _():
        out_ref[...] = jnp.zeros_like(out_ref)

    d = pred_ref[...] - true_ref[...]                       # VPU
    out_ref[...] += jnp.sum(d * d, axis=1, keepdims=True)   # lane reduction (XLU)

    @pl.when(k == pl.num_programs(1) - 1)
    def _():
        out_ref[...] = out_ref[...] * invn_ref[...]         # mean squared deviation


def _choose_tiling(num_ligs, lane_needed):
    """Pick (tb, num_tiles, lk, num_k, lane_pad) — generation-safe VMEM use."""
    lane_pad = max(128, _round_up(lane_needed, 128))

    # Split the lane axis only for very large ligands, so even a tb=8 block
    # (double-buffered, 2 inputs) stays inside the input VMEM budget.
    max_lk = max(128, (_VMEM_INPUT_BUDGET // (2 * 2 * 8 * 4)) // 128 * 128)
    lk = min(lane_pad, max_lk)
    num_k = -(-lane_pad // lk)
    lane_pad = num_k * lk

    row_bytes = lk * 4
    # Ligand tile: don't pad small batches, target ~4 MiB per input block,
    # respect the double-buffered input budget, round to a multiple of 8.
    tb = _round_up(max(num_ligs, 1), 8)
    tb = min(tb, _TB_CAP)
    tb = min(tb, max(8, (_TARGET_BLOCK_BYTES // row_bytes) // 8 * 8))
    tb = min(tb, max(8, (_VMEM_INPUT_BUDGET // (2 * 2 * row_bytes)) // 8 * 8))
    # Keep >= 4 ligand tiles when there's enough work so the "parallel" axis
    # can be sharded across v7x's 2 TensorCores.
    if num_ligs >= 32:
        tb = min(tb, max(8, _round_up(-(-num_ligs // 4), 8)))
    tb = max(8, tb)

    num_tiles = -(-num_ligs // tb)
    return tb, num_tiles, lk, num_k, lane_pad


def _pack(ligs_coords_pred, ligs_coords):
    """numpy host-side packing into a flattened, lane-dense (B_pad, L_pad) slab."""
    assert len(ligs_coords_pred) == len(ligs_coords)
    num_ligs = len(ligs_coords_pred)
    n_max = max(int(np.asarray(p).shape[0]) for p in ligs_coords_pred)
    tb, num_tiles, lk, num_k, lane_pad = _choose_tiling(num_ligs, 3 * n_max)
    b_pad = num_tiles * tb

    pred = np.zeros((b_pad, lane_pad), np.float32)
    true = np.zeros((b_pad, lane_pad), np.float32)
    invn = np.zeros((b_pad, 1), np.float32)
    for i, (p, t) in enumerate(zip(ligs_coords_pred, ligs_coords)):
        p = np.asarray(p, np.float32).reshape(-1)
        t = np.asarray(t, np.float32).reshape(-1)
        pred[i, : p.size] = p
        true[i, : t.size] = t
        n = p.size // 3
        invn[i, 0] = 1.0 / float(n) if n > 0 else 0.0   # guard empty ligands
    return pred, true, invn, num_ligs, tb, num_tiles, lk, num_k


def rmsd_median(ligs_coords_pred, ligs_coords):
    pred, true, invn, num_ligs, tb, num_tiles, lk, num_k = _pack(
        ligs_coords_pred, ligs_coords)

    msd = pl.pallas_call(
        _msd_kernel,
        out_shape=jax.ShapeDtypeStruct((num_tiles * tb, 1), jnp.float32),
        grid=(num_tiles, num_k),
        in_specs=[
            pl.BlockSpec((tb, lk), lambda i, k: (i, k)),
            pl.BlockSpec((tb, lk), lambda i, k: (i, k)),
            pl.BlockSpec((tb, 1), lambda i, k: (i, 0)),
        ],
        out_specs=pl.BlockSpec((tb, 1), lambda i, k: (i, 0)),
        compiler_params=pltpu.CompilerParams(
            dimension_semantics=("parallel", "arbitrary"),
            vmem_limit_bytes=_VMEM_LIMIT_BYTES,
        ),
    )(jnp.asarray(pred), jnp.asarray(true), jnp.asarray(invn))

    msd = msd[:num_ligs, 0]                               # drop padded ligands
    # torch.median returns the LOWER median; sqrt is monotone, so selecting on
    # MSD and taking a single sqrt afterwards is exact.
    med_msd = jnp.sort(msd)[(num_ligs - 1) // 2]
    return jnp.sqrt(med_msd)


def _reference(ligs_coords_pred, ligs_coords):
    rmsds = jnp.stack([
        jnp.sqrt(jnp.mean(jnp.sum((jnp.asarray(p, jnp.float32)
                                   - jnp.asarray(t, jnp.float32)) ** 2, axis=1)))
        for p, t in zip(ligs_coords_pred, ligs_coords)
    ])
    return jnp.sort(rmsds)[(len(ligs_coords_pred) - 1) // 2]   # torch lower median


def _make_inputs(key, atom_counts, noise_scales):
    ligs_coords, ligs_coords_pred = [], []
    for n, s in zip(atom_counts, noise_scales):
        key, k1, k2 = jax.random.split(key, 3)
        true_c = jax.random.normal(k1, (n, 3), dtype=jnp.float32) * 3.0
        pred_c = true_c + jax.random.normal(k2, (n, 3), dtype=jnp.float32) * s
        ligs_coords.append(true_c)
        ligs_coords_pred.append(pred_c)
    return key, ligs_coords_pred, ligs_coords


if __name__ == "__main__":
    key = jax.random.PRNGKey(0)

    # Test 1: small batch (5 ligands) — single tile, no batch padding waste.
    atom_counts = [7, 12, 5, 30, 9]
    noise_scales = [0.05, 0.5, 2.0, 0.2, 1.0]
    key, pred1, true1 = _make_inputs(key, atom_counts, noise_scales)
    res1 = jax.block_until_ready(rmsd_median(pred1, true1))
    ref1 = _reference(pred1, true1)
    assert jnp.allclose(res1, ref1, atol=1e-5, rtol=1e-5), (res1, ref1)

    # Test 2: larger batch (37 ligands) — exercises multi-tile "parallel" axis.
    atom_counts2 = [4 + (7 * i) % 61 for i in range(37)]
    noise_scales2 = [0.05 + 0.1 * (i % 7) for i in range(37)]
    key, pred2, true2 = _make_inputs(key, atom_counts2, noise_scales2)
    res2 = jax.block_until_ready(rmsd_median(pred2, true2))
    ref2 = _reference(pred2, true2)
    assert jnp.allclose(res2, ref2, atol=1e-5, rtol=1e-5), (res2, ref2)

    print("KERNEL_OK")
</pallas_src>

<mosaic_0001>
module attributes {stable_mosaic.version = 11 : i64} {
  func.func @_msd_kernel(%arg0: i32, %arg1: i32, %arg2: memref<8x128xf32, #tpu.memory_space<vmem>>, %arg3: memref<8x128xf32, #tpu.memory_space<vmem>>, %arg4: memref<8x1xf32, #tpu.memory_space<vmem>>, %arg5: memref<8x1xf32, #tpu.memory_space<vmem>>) attributes {dimension_semantics = [#tpu.dimension_semantics<parallel>, #tpu.dimension_semantics<arbitrary>], iteration_bounds = array<i64: 1, 1>, scalar_prefetch = 0 : i64, scratch_operands = 0 : i64, tpu.core_type = #tpu.core_type<tc>, window_params = [{transform_indices = @transform_0, window_bounds = array<i64: 8, 128>}, {transform_indices = @transform_1, window_bounds = array<i64: 8, 128>}, {transform_indices = @transform_2, window_bounds = array<i64: 8, 1>}, {transform_indices = @transform_3, window_bounds = array<i64: 8, 1>}]} {
    %c0_i32 = arith.constant 0 : i32
    %0 = arith.cmpi eq, %arg1, %c0_i32 : i32
    %1 = arith.extui %0 : i1 to i32
    %c0_i32_0 = arith.constant 0 : i32
    %2 = arith.cmpi ne, %1, %c0_i32_0 : i32
    scf.if %2 {
      %cst_10 = arith.constant 0.000000e+00 : f32
      %15 = vector.broadcast %cst_10 : f32 to vector<8x1xf32>
      %c0_11 = arith.constant 0 : index
      %c0_12 = arith.constant 0 : index
      %16 = vector.load %arg5[%c0_11, %c0_12] : memref<8x1xf32, #tpu.memory_space<vmem>>, vector<8x1xf32>
      tpu.vector_store %arg5[%c0_11, %c0_12], %15 {strides = array<i32>} : memref<8x1xf32, #tpu.memory_space<vmem>>, vector<8x1xf32>,
    } else {
    }
    %c0 = arith.constant 0 : index
    %c0_1 = arith.constant 0 : index
    %3 = vector.load %arg2[%c0, %c0_1] : memref<8x128xf32, #tpu.memory_space<vmem>>, vector<8x128xf32>
    %c0_2 = arith.constant 0 : index
    %c0_3 = arith.constant 0 : index
    %4 = vector.load %arg3[%c0_2, %c0_3] : memref<8x128xf32, #tpu.memory_space<vmem>>, vector<8x128xf32>
    %5 = arith.subf %3, %4 : vector<8x128xf32>
    %c0_4 = arith.constant 0 : index
    %c0_5 = arith.constant 0 : index
    %6 = vector.load %arg5[%c0_4, %c0_5] : memref<8x1xf32, #tpu.memory_space<vmem>>, vector<8x1xf32>
    %7 = arith.mulf %5, %5 : vector<8x128xf32>
    %cst = arith.constant dense<0.000000e+00> : vector<8xf32>
    %8 = vector.multi_reduction <add>, %7, %cst [1] : vector<8x128xf32> to vector<8xf32>
    %9 = vector.shape_cast %8 : vector<8xf32> to vector<8x1xf32>
    %10 = arith.addf %6, %9 : vector<8x1xf32>
    %c0_6 = arith.constant 0 : index
    %c0_7 = arith.constant 0 : index
    %11 = vector.load %arg5[%c0_6, %c0_7] : memref<8x1xf32, #tpu.memory_space<vmem>>, vector<8x1xf32>
    tpu.vector_store %arg5[%c0_6, %c0_7], %10 {strides = array<i32>} : memref<8x1xf32, #tpu.memory_space<vmem>>, vector<8x1xf32>,
    %c0_i32_8 = arith.constant 0 : i32
    %12 = arith.cmpi eq, %arg1, %c0_i32_8 : i32
    %13 = arith.extui %12 : i1 to i32
    %c0_i32_9 = arith.constant 0 : i32
    %14 = arith.cmpi ne, %13, %c0_i32_9 : i32
    scf.if %14 {
      %c0_10 = arith.constant 0 : index
      %c0_11 = arith.constant 0 : index
      %15 = vector.load %arg5[%c0_10, %c0_11] : memref<8x1xf32, #tpu.memory_space<vmem>>, vector<8x1xf32>
      %c0_12 = arith.constant 0 : index
      %c0_13 = arith.constant 0 : index
      %16 = vector.load %arg4[%c0_12, %c0_13] : memref<8x1xf32, #tpu.memory_space<vmem>>, vector<8x1xf32>
      %17 = arith.mulf %15, %16 : vector<8x1xf32>
      %c0_14 = arith.constant 0 : index
      %c0_15 = arith.constant 0 : index
      %18 = vector.load %arg5[%c0_14, %c0_15] : memref<8x1xf32, #tpu.memory_space<vmem>>, vector<8x1xf32>
      tpu.vector_store %arg5[%c0_14, %c0_15], %17 {strides = array<i32>} : memref<8x1xf32, #tpu.memory_space<vmem>>, vector<8x1xf32>,
    } else {
    }
    return
  }
  func.func @transform_0(%arg0: i32, %arg1: i32) -> (i32, i32) {
    %c0_i32 = arith.constant 0 : i32
    return %arg0, %arg1 : i32, i32
  }
  func.func @transform_1(%arg0: i32, %arg1: i32) -> (i32, i32) {
    %c0_i32 = arith.constant 0 : i32
    return %arg0, %arg1 : i32, i32
  }
  func.func @transform_2(%arg0: i32, %arg1: i32) -> (i32, i32) {
    %c0_i32 = arith.constant 0 : i32
    %c0_i32_0 = arith.constant 0 : i32
    return %arg0, %c0_i32 : i32, i32
  }
  func.func @transform_3(%arg0: i32, %arg1: i32) -> (i32, i32) {
    %c0_i32 = arith.constant 0 : i32
    %c0_i32_0 = arith.constant 0 : i32
    return %arg0, %c0_i32 : i32, i32
  }
}

</mosaic_0001>

<bundles_post_ra>
// kernel: tpu_custom_call.1
= control target key start
LH: loop header
LB: loop body
LE: loop exit
PB: predicated region body
PF: predicated region fallthrough
CT: control target
= control target key end

     0   :  { %8 = vsyncpa [#allocation3], 0  ;;  %s80_s12 = smov [#allocation2]   ;;  %s135_s0 = inlined_call_operand.vmem [shape: f32[8,128], index: 0, kind: input, shape index: {}]   ;;  %s136_s1 = inlined_call_operand.hbm [shape: f32[8,128], index: 1, kind: input, shape index: {}]   ;;  %s137_s2 = inlined_call_operand.vmem [shape: f32[8,1], index: 2, kind: input, shape index: {}]   ;;  %s138_s3 = inlined_call_operand.vmem [shape: f32[8,1], index: 3, kind: output, shape index: {}]  }
   0x1   :  { %s17_s13 = sshll.u32 %s80_s12, 4  ;;  %s56_s16 = scalar_lea.hbm %s136_s1, 128  ;;  %s18_s13 = int_to_ptr.vmem [resolvable:$true] %s17_s13 }
   0x2   :  { %p57_p0 = scmp.ne.s32.totalorder %s136_s1, %s56_s16  ;;  %p60_p1 = scmp.lt.u32.totalorder %s56_s16, %s136_s1 }
   0x4   :  { %p62_p2 = pnand %p60_p1, %p57_p0 }
   0x6   :  { %65 = shalt.err (!%p62_p2)
}
   0x7   :  { %s66_s21 = scalar_lea.vmem %s18_s13, 128  ;;  %p71_p4 = scmp.lt.s32.totalorder %s18_s13, %s18_s13 }
   0x8   :  { %p67_p3 = scmp.ne.s32.totalorder %s18_s13, %s66_s21  ;;  %p72_p5 = scmp.lt.s32.totalorder %s66_s21, %s66_s21 }
   0xa   :  { %p73_p6 = por %p72_p5, %p71_p4 }
   0xc   :  { %p74_p7 = pnand %p73_p6, %p67_p3 }
   0xe   :  { %77 = shalt.err (!%p74_p7)
}
   0xf   :  { %20 = dma.hbm_to_vmem [thread:$0]  %s136_s1, 128, %s18_s13, [#allocation3]  }
  0x10   :  { %78 = dma.done.wait [#allocation3], 128  }
  0x11   :  { %79 = vsyncadd [#allocation3], 4294967168  ;;  %vm30_vm0 = vcmask 7168   ;;  %v81_v0 = vmov 0.0   ;;  %v32_v1 = vld [vmem:[%s135_s0] sm:$0xff] }
  0x12   :  { %31 = vst.msk [vmem:[%s138_s3] sm:$0xff] %vm30_vm0, %v81_v0  ;;  %v33_v2 = vld [vmem:[#allocation2] sm:$0xff] }
  0x13   :  { %v34_v3 = vsub.f32 %v32_v1, %v33_v2  ;;  %v46_v8 = vld [vmem:[%s137_s2] sm:$0xff] }
  0x15   :  { %v36_v4 = vmul.f32 %v34_v3, %v34_v3 }
  0x17   :  { %37 = vadd.xlane.f32.xlu0 %v36_v4 }
  0x19   :  { %v35_v5 = vld [vmem:[%s138_s3] sm:$0xff] }
  0xa4   :  { %v38_v6 = vpop.xlane.xlu0 %37 }
  0xa5   :  { %v39_v7 = vadd.f32 %v38_v6, %v35_v5 }
  0xa7   :  { %41 = vst.msk [vmem:[%s138_s3] sm:$0xff] %vm30_vm0, %v39_v7 }
  0xae   :  { %v45_v9 = vld [vmem:[%s138_s3] sm:$0xff] }
  0xaf   :  { %v47_v10 = vmul.f32 %v46_v8, %v45_v9 }
  0xb1   :  { %48 = vst.msk [vmem:[%s138_s3] sm:$0xff] %vm30_vm0, %v47_v10 }
  0xb2   :  { %53 = vsyncpa [#allocation3], 1 }

</bundles_post_ra>
